<compile_context>
chip_gen: v7x
topology: tpu7x:2x2x1
jax: 0.10.0
libtpu: 0.0.40
codegen_flags: <defaults>
</compile_context>

<pallas_src>
from typing import List, Sequence

import numpy as np
import jax
import jax.numpy as jnp
from jax.experimental import pallas as pl
from jax.experimental.pallas import tpu as pltpu

SPACE = "\u2581"  # the SentencePiece meta symbol "▁"

B_PAD = 8    # padded batch of lines per kernel launch
S_PAD = 32   # padded number of start positions (multiple of 8)
V = 128      # vocabulary size (lane-dense)
L = 8        # max piece length in codepoints
NO_MATCH_KEY = 0  # emitted when no vocab piece matches a position


# --------------------------------------------------------------------------
# Pallas kernel: per-start best-piece key (match + fused lane-max reduce).
# --------------------------------------------------------------------------
def _match_kernel(win_ref, pieces_ref, valid_ref, keys_ref, out_ref):
    """out[0, s, 0] = max_v { (len(v)*V + v) if piece v matches text at s else 0 }."""
    win = win_ref[0]            # [S_PAD, L]  int32 (this line's windows)
    pieces = pieces_ref[...]    # [L, V]      int32
    valid = valid_ref[...]      # [L, V]      int32: -1 (all ones) if l < len(v) else 0
    keys = keys_ref[...]        # [1, V]      int32: len(v) * V + v

    # Integer mismatch accumulation: one live [S_PAD, V] accumulator.
    # (w ^ p) is 0 iff codepoints match; & with the -1/0 validity mask drops
    # positions past the end of the piece.  OR keeps any mismatch sticky.
    mismatch = jnp.zeros((S_PAD, V), dtype=jnp.int32)
    for l in range(L):
        w_col = win[:, l:l + 1]            # [S_PAD, 1] (lane broadcast -> idle XLU)
        p_row = pieces[l, :][None, :]      # [1, V]
        m_row = valid[l, :][None, :]       # [1, V]
        mismatch = mismatch | ((w_col ^ p_row) & m_row)

    keyed = jnp.where(mismatch == 0, keys, NO_MATCH_KEY)    # [S_PAD, V] int32
    best = jnp.max(keyed, axis=-1, keepdims=True)           # [S_PAD, 1] XLU reduce
    out_ref[...] = best[None, :, :]                          # [1, S_PAD, 1]


def _match_best_keys(windows, pieces_t, valid_t, keys):
    """Batched pallas_call: grid over lines; vocab tables DMA'd with constant maps."""
    return pl.pallas_call(
        _match_kernel,
        out_shape=jax.ShapeDtypeStruct((B_PAD, S_PAD, 1), jnp.int32),
        grid=(B_PAD,),
        in_specs=[
            pl.BlockSpec((1, S_PAD, L), lambda b: (b, 0, 0)),   # per-line windows
            pl.BlockSpec((L, V), lambda b: (0, 0)),             # pieces (constant)
            pl.BlockSpec((L, V), lambda b: (0, 0)),             # valid mask (constant)
            pl.BlockSpec((1, V), lambda b: (0, 0)),             # keys (constant)
        ],
        out_specs=pl.BlockSpec((1, S_PAD, 1), lambda b: (b, 0, 0)),
        compiler_params=pltpu.CompilerParams(
            dimension_semantics=("parallel",)),                 # v7x: 2 TCs split B
    )(windows, pieces_t, valid_t, keys)


_encode_device = jax.jit(_match_best_keys)


# --------------------------------------------------------------------------
# Tokenizer proxy: vocab constants built once and cached on device.
# --------------------------------------------------------------------------
class PallasSentencePieceTokenizer:
    """Proxy for torchtext SentencePieceTokenizer (forward: str -> List[str])."""

    def __init__(self, key):
        multi = [SPACE + "the", SPACE + "pre", "trained",
                 SPACE + "sp", SPACE + "model", SPACE + "names"]
        singles = [SPACE] + list("abcdefghijklmnopqrstuvwxyz")
        vocab = multi + singles
        n_fill = V - len(vocab)
        assert n_fill >= 0
        # Filler pieces use high codepoints that never occur in the input
        # alphabet; drawn once at construction time (not per line).
        filler_cp = np.asarray(jax.random.randint(key, (n_fill,), 50000, 60000))
        vocab = vocab + [chr(int(c)) for c in filler_cp]

        pieces = np.zeros((V, L), dtype=np.int32)
        lens = np.zeros((V,), dtype=np.int32)
        for v, p in enumerate(vocab):
            cps = [ord(c) for c in p][:L]
            pieces[v, :len(cps)] = cps
            lens[v] = len(cps)
        # validity as a full-width bitmask (-1 = all ones) so (w ^ p) & mask works.
        valid = np.where(np.arange(L)[None, :] < lens[:, None], -1, 0).astype(np.int32)
        # per-piece int32 key: length * V + index (exact, max = 8*128+127 = 1151).
        keys = (lens * V + np.arange(V, dtype=np.int32)).astype(np.int32)[None, :]

        self.vocab = vocab
        self.lens = lens
        # Device-resident constants, uploaded once and reused for every call.
        self._pieces_t = jnp.asarray(pieces.T)      # [L, V] int32
        self._valid_t = jnp.asarray(valid.T)        # [L, V] int32 (-1 / 0)
        self._keys = jnp.asarray(keys)              # [1, V] int32

    # ------------------------------------------------------------------ #
    def _build_windows(self, lines: Sequence[str]):
        """windows[b, s, l] = codepoint of line b at position s+l (-1 past end)."""
        assert len(lines) <= B_PAD, "batch too large for this demo (B_PAD=%d)" % B_PAD
        windows = np.full((B_PAD, S_PAD + L), -1, dtype=np.int32)
        lens = []
        for b, line in enumerate(lines):
            escaped = SPACE + line.replace(" ", SPACE)
            n = len(escaped)
            assert n <= S_PAD, "line too long for this demo (S_PAD=%d)" % S_PAD
            windows[b, :n] = np.fromiter((ord(c) for c in escaped),
                                         dtype=np.int32, count=n)
            lens.append(n)
        idx = np.arange(S_PAD)[:, None] + np.arange(L)[None, :]
        return jnp.asarray(windows[:, idx]), lens          # [B_PAD, S_PAD, L]

    def forward_batch(self, lines: Sequence[str]) -> List[List[str]]:
        windows, n_chars = self._build_windows(lines)
        out = _encode_device(windows, self._pieces_t, self._valid_t, self._keys)
        out = jax.block_until_ready(out)
        best_keys = np.asarray(jax.device_get(out))[:, :, 0]   # single host sync

        results: List[List[str]] = []
        for b, n in enumerate(n_chars):
            pieces_out: List[str] = []
            pos = 0
            while pos < n:
                key = int(best_keys[b, pos])
                if key == NO_MATCH_KEY:
                    raise RuntimeError("no matching piece at position %d" % pos)
                v = key % V
                pieces_out.append(self.vocab[v])
                pos += int(self.lens[v])
            results.append(pieces_out)
        return results

    def forward(self, line: str) -> List[str]:
        return self.forward_batch([line])[0]

    __call__ = forward

    def decode(self, tokens: List[str]) -> str:
        """Proxy for SentencePieceTokenizer.decode: List[str] -> str."""
        return "".join(tokens).replace(SPACE, " ").lstrip(" ")


if __name__ == "__main__":
    key = jax.random.PRNGKey(0)
    tokenizer = PallasSentencePieceTokenizer(key)

    line = "the pretrained sp model names"
    pieces_out = tokenizer(line)
    expected = [SPACE + "the", SPACE + "pre", "trained",
                SPACE + "sp", SPACE + "model", SPACE + "names"]
    assert pieces_out == expected, pieces_out
    assert tokenizer.decode(pieces_out) == line

    # Batched call: both lines in one pallas_call (reuses the compiled jit).
    batch_out = tokenizer.forward_batch([line, "the sp names"])
    assert batch_out[0] == expected
    assert tokenizer.decode(batch_out[1]) == "the sp names"

    print("KERNEL_OK")
</pallas_src>

<mosaic_0001>
module attributes {stable_mosaic.version = 11 : i64} {
  func.func @_match_kernel(%arg0: i32, %arg1: memref<1x32x8xi32, #tpu.memory_space<vmem>>, %arg2: memref<8x128xi32, #tpu.memory_space<vmem>>, %arg3: memref<8x128xi32, #tpu.memory_space<vmem>>, %arg4: memref<1x128xi32, #tpu.memory_space<vmem>>, %arg5: memref<1x32x1xi32, #tpu.memory_space<vmem>>) attributes {dimension_semantics = [#tpu.dimension_semantics<parallel>], iteration_bounds = array<i64: 8>, scalar_prefetch = 0 : i64, scratch_operands = 0 : i64, tpu.core_type = #tpu.core_type<tc>, window_params = [{transform_indices = @transform_0, window_bounds = array<i64: 1, 32, 8>}, {pipeline_mode = #tpu.pipeline_mode<synchronous>, transform_indices = @transform_1, window_bounds = array<i64: 8, 128>}, {pipeline_mode = #tpu.pipeline_mode<synchronous>, transform_indices = @transform_2, window_bounds = array<i64: 8, 128>}, {pipeline_mode = #tpu.pipeline_mode<synchronous>, transform_indices = @transform_3, window_bounds = array<i64: 1, 128>}, {transform_indices = @transform_4, window_bounds = array<i64: 1, 32, 1>}]} {
    %c0 = arith.constant 0 : index
    %c0_0 = arith.constant 0 : index
    %c0_1 = arith.constant 0 : index
    %0 = vector.load %arg1[%c0, %c0_0, %c0_1] : memref<1x32x8xi32, #tpu.memory_space<vmem>>, vector<1x32x8xi32>
    %1 = vector.shape_cast %0 : vector<1x32x8xi32> to vector<32x8xi32>
    %c0_2 = arith.constant 0 : index
    %c0_3 = arith.constant 0 : index
    %2 = vector.load %arg2[%c0_2, %c0_3] : memref<8x128xi32, #tpu.memory_space<vmem>>, vector<8x128xi32>
    %c0_4 = arith.constant 0 : index
    %c0_5 = arith.constant 0 : index
    %3 = vector.load %arg3[%c0_4, %c0_5] : memref<8x128xi32, #tpu.memory_space<vmem>>, vector<8x128xi32>
    %c0_6 = arith.constant 0 : index
    %c0_7 = arith.constant 0 : index
    %4 = vector.load %arg4[%c0_6, %c0_7] : memref<1x128xi32, #tpu.memory_space<vmem>>, vector<1x128xi32>
    %c0_i32 = arith.constant 0 : i32
    %5 = vector.broadcast %c0_i32 : i32 to vector<32x128xi32>
    %6 = vector.extract_strided_slice %1 {offsets = [0, 0], sizes = [32, 1], strides = [1, 1]} : vector<32x8xi32> to vector<32x1xi32>
    %7 = vector.extract_strided_slice %2 {offsets = [0, 0], sizes = [1, 128], strides = [1, 1]} : vector<8x128xi32> to vector<1x128xi32>
    %8 = vector.shape_cast %7 : vector<1x128xi32> to vector<128xi32>
    %9 = vector.shape_cast %8 : vector<128xi32> to vector<1x128xi32>
    %10 = vector.extract_strided_slice %3 {offsets = [0, 0], sizes = [1, 128], strides = [1, 1]} : vector<8x128xi32> to vector<1x128xi32>
    %11 = vector.shape_cast %10 : vector<1x128xi32> to vector<128xi32>
    %12 = vector.shape_cast %11 : vector<128xi32> to vector<1x128xi32>
    %13 = vector.broadcast %6 : vector<32x1xi32> to vector<32x128xi32>
    %14 = vector.broadcast %9 : vector<1x128xi32> to vector<32x128xi32>
    %15 = arith.xori %13, %14 : vector<32x128xi32>
    %16 = vector.broadcast %12 : vector<1x128xi32> to vector<32x128xi32>
    %17 = arith.andi %15, %16 : vector<32x128xi32>
    %18 = arith.ori %5, %17 : vector<32x128xi32>
    %19 = vector.extract_strided_slice %1 {offsets = [0, 1], sizes = [32, 1], strides = [1, 1]} : vector<32x8xi32> to vector<32x1xi32>
    %20 = vector.extract_strided_slice %2 {offsets = [1, 0], sizes = [1, 128], strides = [1, 1]} : vector<8x128xi32> to vector<1x128xi32>
    %21 = vector.shape_cast %20 : vector<1x128xi32> to vector<128xi32>
    %22 = vector.shape_cast %21 : vector<128xi32> to vector<1x128xi32>
    %23 = vector.extract_strided_slice %3 {offsets = [1, 0], sizes = [1, 128], strides = [1, 1]} : vector<8x128xi32> to vector<1x128xi32>
    %24 = vector.shape_cast %23 : vector<1x128xi32> to vector<128xi32>
    %25 = vector.shape_cast %24 : vector<128xi32> to vector<1x128xi32>
    %26 = vector.broadcast %19 : vector<32x1xi32> to vector<32x128xi32>
    %27 = vector.broadcast %22 : vector<1x128xi32> to vector<32x128xi32>
    %28 = arith.xori %26, %27 : vector<32x128xi32>
    %29 = vector.broadcast %25 : vector<1x128xi32> to vector<32x128xi32>
    %30 = arith.andi %28, %29 : vector<32x128xi32>
    %31 = arith.ori %18, %30 : vector<32x128xi32>
    %32 = vector.extract_strided_slice %1 {offsets = [0, 2], sizes = [32, 1], strides = [1, 1]} : vector<32x8xi32> to vector<32x1xi32>
    %33 = vector.extract_strided_slice %2 {offsets = [2, 0], sizes = [1, 128], strides = [1, 1]} : vector<8x128xi32> to vector<1x128xi32>
    %34 = vector.shape_cast %33 : vector<1x128xi32> to vector<128xi32>
    %35 = vector.shape_cast %34 : vector<128xi32> to vector<1x128xi32>
    %36 = vector.extract_strided_slice %3 {offsets = [2, 0], sizes = [1, 128], strides = [1, 1]} : vector<8x128xi32> to vector<1x128xi32>
    %37 = vector.shape_cast %36 : vector<1x128xi32> to vector<128xi32>
    %38 = vector.shape_cast %37 : vector<128xi32> to vector<1x128xi32>
    %39 = vector.broadcast %32 : vector<32x1xi32> to vector<32x128xi32>
    %40 = vector.broadcast %35 : vector<1x128xi32> to vector<32x128xi32>
    %41 = arith.xori %39, %40 : vector<32x128xi32>
    %42 = vector.broadcast %38 : vector<1x128xi32> to vector<32x128xi32>
    %43 = arith.andi %41, %42 : vector<32x128xi32>
    %44 = arith.ori %31, %43 : vector<32x128xi32>
    %45 = vector.extract_strided_slice %1 {offsets = [0, 3], sizes = [32, 1], strides = [1, 1]} : vector<32x8xi32> to vector<32x1xi32>
    %46 = vector.extract_strided_slice %2 {offsets = [3, 0], sizes = [1, 128], strides = [1, 1]} : vector<8x128xi32> to vector<1x128xi32>
    %47 = vector.shape_cast %46 : vector<1x128xi32> to vector<128xi32>
    %48 = vector.shape_cast %47 : vector<128xi32> to vector<1x128xi32>
    %49 = vector.extract_strided_slice %3 {offsets = [3, 0], sizes = [1, 128], strides = [1, 1]} : vector<8x128xi32> to vector<1x128xi32>
    %50 = vector.shape_cast %49 : vector<1x128xi32> to vector<128xi32>
    %51 = vector.shape_cast %50 : vector<128xi32> to vector<1x128xi32>
    %52 = vector.broadcast %45 : vector<32x1xi32> to vector<32x128xi32>
    %53 = vector.broadcast %48 : vector<1x128xi32> to vector<32x128xi32>
    %54 = arith.xori %52, %53 : vector<32x128xi32>
    %55 = vector.broadcast %51 : vector<1x128xi32> to vector<32x128xi32>
    %56 = arith.andi %54, %55 : vector<32x128xi32>
    %57 = arith.ori %44, %56 : vector<32x128xi32>
    %58 = vector.extract_strided_slice %1 {offsets = [0, 4], sizes = [32, 1], strides = [1, 1]} : vector<32x8xi32> to vector<32x1xi32>
    %59 = vector.extract_strided_slice %2 {offsets = [4, 0], sizes = [1, 128], strides = [1, 1]} : vector<8x128xi32> to vector<1x128xi32>
    %60 = vector.shape_cast %59 : vector<1x128xi32> to vector<128xi32>
    %61 = vector.shape_cast %60 : vector<128xi32> to vector<1x128xi32>
    %62 = vector.extract_strided_slice %3 {offsets = [4, 0], sizes = [1, 128], strides = [1, 1]} : vector<8x128xi32> to vector<1x128xi32>
    %63 = vector.shape_cast %62 : vector<1x128xi32> to vector<128xi32>
    %64 = vector.shape_cast %63 : vector<128xi32> to vector<1x128xi32>
    %65 = vector.broadcast %58 : vector<32x1xi32> to vector<32x128xi32>
    %66 = vector.broadcast %61 : vector<1x128xi32> to vector<32x128xi32>
    %67 = arith.xori %65, %66 : vector<32x128xi32>
    %68 = vector.broadcast %64 : vector<1x128xi32> to vector<32x128xi32>
    %69 = arith.andi %67, %68 : vector<32x128xi32>
    %70 = arith.ori %57, %69 : vector<32x128xi32>
    %71 = vector.extract_strided_slice %1 {offsets = [0, 5], sizes = [32, 1], strides = [1, 1]} : vector<32x8xi32> to vector<32x1xi32>
    %72 = vector.extract_strided_slice %2 {offsets = [5, 0], sizes = [1, 128], strides = [1, 1]} : vector<8x128xi32> to vector<1x128xi32>
    %73 = vector.shape_cast %72 : vector<1x128xi32> to vector<128xi32>
    %74 = vector.shape_cast %73 : vector<128xi32> to vector<1x128xi32>
    %75 = vector.extract_strided_slice %3 {offsets = [5, 0], sizes = [1, 128], strides = [1, 1]} : vector<8x128xi32> to vector<1x128xi32>
    %76 = vector.shape_cast %75 : vector<1x128xi32> to vector<128xi32>
    %77 = vector.shape_cast %76 : vector<128xi32> to vector<1x128xi32>
    %78 = vector.broadcast %71 : vector<32x1xi32> to vector<32x128xi32>
    %79 = vector.broadcast %74 : vector<1x128xi32> to vector<32x128xi32>
    %80 = arith.xori %78, %79 : vector<32x128xi32>
    %81 = vector.broadcast %77 : vector<1x128xi32> to vector<32x128xi32>
    %82 = arith.andi %80, %81 : vector<32x128xi32>
    %83 = arith.ori %70, %82 : vector<32x128xi32>
    %84 = vector.extract_strided_slice %1 {offsets = [0, 6], sizes = [32, 1], strides = [1, 1]} : vector<32x8xi32> to vector<32x1xi32>
    %85 = vector.extract_strided_slice %2 {offsets = [6, 0], sizes = [1, 128], strides = [1, 1]} : vector<8x128xi32> to vector<1x128xi32>
    %86 = vector.shape_cast %85 : vector<1x128xi32> to vector<128xi32>
    %87 = vector.shape_cast %86 : vector<128xi32> to vector<1x128xi32>
    %88 = vector.extract_strided_slice %3 {offsets = [6, 0], sizes = [1, 128], strides = [1, 1]} : vector<8x128xi32> to vector<1x128xi32>
    %89 = vector.shape_cast %88 : vector<1x128xi32> to vector<128xi32>
    %90 = vector.shape_cast %89 : vector<128xi32> to vector<1x128xi32>
    %91 = vector.broadcast %84 : vector<32x1xi32> to vector<32x128xi32>
    %92 = vector.broadcast %87 : vector<1x128xi32> to vector<32x128xi32>
    %93 = arith.xori %91, %92 : vector<32x128xi32>
    %94 = vector.broadcast %90 : vector<1x128xi32> to vector<32x128xi32>
    %95 = arith.andi %93, %94 : vector<32x128xi32>
    %96 = arith.ori %83, %95 : vector<32x128xi32>
    %97 = vector.extract_strided_slice %1 {offsets = [0, 7], sizes = [32, 1], strides = [1, 1]} : vector<32x8xi32> to vector<32x1xi32>
    %98 = vector.extract_strided_slice %2 {offsets = [7, 0], sizes = [1, 128], strides = [1, 1]} : vector<8x128xi32> to vector<1x128xi32>
    %99 = vector.shape_cast %98 : vector<1x128xi32> to vector<128xi32>
    %100 = vector.shape_cast %99 : vector<128xi32> to vector<1x128xi32>
    %101 = vector.extract_strided_slice %3 {offsets = [7, 0], sizes = [1, 128], strides = [1, 1]} : vector<8x128xi32> to vector<1x128xi32>
    %102 = vector.shape_cast %101 : vector<1x128xi32> to vector<128xi32>
    %103 = vector.shape_cast %102 : vector<128xi32> to vector<1x128xi32>
    %104 = vector.broadcast %97 : vector<32x1xi32> to vector<32x128xi32>
    %105 = vector.broadcast %100 : vector<1x128xi32> to vector<32x128xi32>
    %106 = arith.xori %104, %105 : vector<32x128xi32>
    %107 = vector.broadcast %103 : vector<1x128xi32> to vector<32x128xi32>
    %108 = arith.andi %106, %107 : vector<32x128xi32>
    %109 = arith.ori %96, %108 : vector<32x128xi32>
    %c0_i32_8 = arith.constant 0 : i32
    %110 = vector.broadcast %c0_i32_8 : i32 to vector<32x128xi32>
    %111 = arith.cmpi eq, %109, %110 : vector<32x128xi32>
    %c0_i32_9 = arith.constant 0 : i32
    %112 = vector.shape_cast %4 : vector<1x128xi32> to vector<1x128xi32>
    %113 = vector.broadcast %112 : vector<1x128xi32> to vector<32x128xi32>
    %114 = vector.broadcast %c0_i32_9 : i32 to vector<32x128xi32>
    %115 = arith.select %111, %113, %114 : vector<32x128xi1>, vector<32x128xi32>
    %cst = arith.constant dense<-2147483648> : vector<32xi32>
    %116 = vector.multi_reduction <maxsi>, %115, %cst [1] : vector<32x128xi32> to vector<32xi32>
    %117 = vector.shape_cast %116 : vector<32xi32> to vector<32x1xi32>
    %118 = vector.shape_cast %117 : vector<32x1xi32> to vector<1x32x1xi32>
    %c0_10 = arith.constant 0 : index
    %c0_11 = arith.constant 0 : index
    %c0_12 = arith.constant 0 : index
    %119 = vector.load %arg5[%c0_10, %c0_11, %c0_12] : memref<1x32x1xi32, #tpu.memory_space<vmem>>, vector<1x32x1xi32>
    tpu.vector_store %arg5[%c0_10, %c0_11, %c0_12], %118 {strides = array<i32>} : memref<1x32x1xi32, #tpu.memory_space<vmem>>, vector<1x32x1xi32>,
    return
  }
  func.func @transform_0(%arg0: i32) -> (i32, i32, i32) {
    %c0_i32 = arith.constant 0 : i32
    %c0_i32_0 = arith.constant 0 : i32
    %c0_i32_1 = arith.constant 0 : i32
    return %arg0, %c0_i32, %c0_i32_0 : i32, i32, i32
  }
  func.func @transform_1(%arg0: i32) -> (i32, i32) {
    %c0_i32 = arith.constant 0 : i32
    %c0_i32_0 = arith.constant 0 : i32
    %c0_i32_1 = arith.constant 0 : i32
    return %c0_i32, %c0_i32_0 : i32, i32
  }
  func.func @transform_2(%arg0: i32) -> (i32, i32) {
    %c0_i32 = arith.constant 0 : i32
    %c0_i32_0 = arith.constant 0 : i32
    %c0_i32_1 = arith.constant 0 : i32
    return %c0_i32, %c0_i32_0 : i32, i32
  }
  func.func @transform_3(%arg0: i32) -> (i32, i32) {
    %c0_i32 = arith.constant 0 : i32
    %c0_i32_0 = arith.constant 0 : i32
    %c0_i32_1 = arith.constant 0 : i32
    return %c0_i32, %c0_i32_0 : i32, i32
  }
  func.func @transform_4(%arg0: i32) -> (i32, i32, i32) {
    %c0_i32 = arith.constant 0 : i32
    %c0_i32_0 = arith.constant 0 : i32
    %c0_i32_1 = arith.constant 0 : i32
    return %arg0, %c0_i32, %c0_i32_0 : i32, i32, i32
  }
}

</mosaic_0001>

<bundles_post_ra>
// kernel: _match_best_keys.1
= control target key start
LH: loop header
LB: loop body
LE: loop exit
PB: predicated region body
PF: predicated region fallthrough
CT: control target
= control target key end

     0   :  { %s672_s15 = smov 0   ;;  %s857_s0 = inlined_call_operand.vmem [shape: s32[8,32,8], index: 0, kind: input, shape index: {}]   ;;  %s858_s1 = inlined_call_operand.vmem [shape: s32[8,128], index: 1, kind: input, shape index: {}]   ;;  %s859_s2 = inlined_call_operand.vmem [shape: s32[8,128], index: 2, kind: input, shape index: {}]   ;;  %s860_s3 = inlined_call_operand.vmem [shape: s32[1,128], index: 3, kind: input, shape index: {}]   ;;  %s861_s4 = inlined_call_operand.vmem [shape: s32[8,32,1], index: 4, kind: output, shape index: {}]  }
   0x1 LB: > { %s585_s16 = sadd.s32 4294967295, %s637_s15   ;;  %p589_p0 = scmp.ge.s32.totalorder %s637_s15, 1  ;;  %s637_s15 = sphi %s672_s15, %s14_s15  }
   0x2   : > { %p162_p1 = scmp.lt.s32.totalorder %s637_s15, 9 }
   0x4   : > { %p163_p2 = pnand %p589_p0, %p162_p1 }
   0x5   : > { %p188_p3 = scmp.lt.s32.totalorder (!%p163_p2), %s585_s16, 7  ;;  %v639_v0 = vmov (!%p163_p2), 0   ;;  %v640_v5 = vmov (!%p163_p2), 1   ;;  %v641_v6 = vmov (!%p163_p2), 2   ;;  %v642_v7 = vmov (!%p163_p2), 3   ;;  %v202_v32 = vld [vmem:[%s858_s1] sm:$0xff] (!%p163_p2) }
   0x6   : > { %166 = sbr.rel (%p163_p2) target bundleno = 527 (0x20f), region = 36  ;;  %616 = vset.pattern.permute.xlu1 (!%p163_p2), %v639_v0  ;;  %615 = vset.pattern.permute.xlu0 (!%p163_p2), %v639_v0  ;;  %v643_v8 = vmov (!%p163_p2), 4   ;;  %v644_v9 = vmov (!%p163_p2), 5   ;;  %v645_v10 = vmov (!%p163_p2), 6   ;;  %v646_v11 = vmov (!%p163_p2), 7   ;;  %v203_v39 = vld [vmem:[%s859_s2] sm:$0xff] (!%p163_p2) }
   0x7   : > { %v217_v25 = vlaneseq (!%p163_p2)  ;;  %vm525_vm8 = vcmask (!%p163_p2), 7168  }
   0x9   : > { %v708_v28 = vshrl.u32 (!%p163_p2), %v217_v25, 7 }
   0xb   : > { %v219_v30 = vsub.s32 (!%p163_p2), 0, %v708_v28  ;;  %v247_v31 = vsub.s32 (!%p163_p2), 1, %v708_v28  ;;  %v279_v35 = vsub.s32 (!%p163_p2), 2, %v708_v28  ;;  %v311_v38 = vsub.s32 (!%p163_p2), 3, %v708_v28 }
   0xc   : > { %v343_v48 = vsub.s32 (!%p163_p2), 4, %v708_v28  ;;  %v375_v49 = vsub.s32 (!%p163_p2), 5, %v708_v28 }
   0xd   : > { %s863_s16 = smov (!%p188_p3, %s585_s16), 7  ;;  %v720_v36 = vrot.slane %v202_v32, %v219_v30  ;;  %v722_v37 = vrot.slane %v202_v32, %v247_v31  ;;  %v732_v44 = vrot.slane %v202_v32, %v279_v35  ;;  %v734_v45 = vrot.slane %v203_v39, %v219_v30 }
   0xe   : > { %s597_s17 = sshll.u32 %s863_s16, 5  ;;  %v256_v46 = vrot.slane %v203_v39, %v247_v31  ;;  %v736_v47 = vrot.slane %v202_v32, %v311_v38  ;;  %v745_v54 = vrot.slane %v203_v39, %v279_v35  ;;  %v748_v56 = vrot.slane %v203_v39, %v311_v38 }
   0xf   : > { %s192_s20 = scalar_lea.vmem %s857_s0, %s597_s17  ;;  %v751_v58 = vrot.slane %v202_v32, %v343_v48  ;;  %v754_v60 = vrot.slane %v202_v32, %v375_v49  ;;  %s197_s29 = scalar_lea.vmem %s861_s4, %s597_s17 }
  0x10   : > { %v200_v1 = vld [vmem:[%s192_s20 + $0x10] sm:$0xff]  ;;  %v198_v2 = vld [vmem:[%s192_s20] sm:$0xff]  ;;  %v201_v3 = vld [vmem:[%s192_s20 + $0x18] sm:$0xff] }
  0x11   : > { %212 = vperm.xlu1 %616, %v200_v1   ;;  %206 = vperm.xlu0 %615, %v198_v2   ;;  %v199_v4 = vld [vmem:[%s192_s20 + $0x8] sm:$0xff] }
  0x15   : > { %215 = vperm.xlu1 %616, %v201_v3   ;;  %209 = vperm.xlu0 %615, %v199_v4  }
  0x19   : > { %618 = vset.pattern.permute.xlu1 %v640_v5  ;;  %617 = vset.pattern.permute.xlu0 %v640_v5 }
  0x1a   : > { %237 = vperm.xlu1 %618, %v199_v4   ;;  %234 = vperm.xlu0 %617, %v198_v2  }
  0x1e   : > { %240 = vperm.xlu1 %618, %v200_v1   ;;  %243 = vperm.xlu0 %617, %v201_v3  }
  0x22   : > { %619 = vset.pattern.permute.xlu1 %v641_v6  ;;  %620 = vset.pattern.permute.xlu0 %v641_v6 }
  0x23   : > { %266 = vperm.xlu1 %619, %v198_v2   ;;  %269 = vperm.xlu0 %620, %v199_v4  }
  0x27   : > { %272 = vperm.xlu1 %619, %v200_v1   ;;  %621 = vset.pattern.permute.xlu0 %v642_v7 }
  0x28   : > { %298 = vperm.xlu0 %621, %v198_v2  }
  0x2b   : > { %275 = vperm.xlu1 %619, %v201_v3  }
  0x2c   : > { %307 = vperm.xlu0 %621, %v201_v3  }
  0x2f   : > { %622 = vset.pattern.permute.xlu1 %v642_v7 }
  0x30   : > { %301 = vperm.xlu1 %622, %v199_v4   ;;  %624 = vset.pattern.permute.xlu0 %v643_v8 }
  0x31   : > { %333 = vperm.xlu0 %624, %v199_v4  }
  0x34   : > { %304 = vperm.xlu1 %622, %v200_v1  }
  0x35   : > { %625 = vset.pattern.permute.xlu0 %v644_v9 }
  0x36   : > { %362 = vperm.xlu0 %625, %v198_v2  }
  0x38   : > { %623 = vset.pattern.permute.xlu1 %v643_v8  ;;  %v772_v8 = vrot.slane %v203_v39, %v343_v48 }
  0x39   : > { %330 = vperm.xlu1 %623, %v198_v2  }
  0x3a   : > { %371 = vperm.xlu0 %625, %v201_v3  }
  0x3d   : > { %336 = vperm.xlu1 %623, %v200_v1  }
  0x3e   : > { %628 = vset.pattern.permute.xlu0 %v645_v10 }
  0x3f   : > { %397 = vperm.xlu0 %628, %v199_v4  }
  0x41   : > { %339 = vperm.xlu1 %623, %v201_v3  }
  0x43   : > { %629 = vset.pattern.permute.xlu0 %v646_v11 }
  0x44   : > { %426 = vperm.xlu0 %629, %v198_v2  }
  0x45   : > { %626 = vset.pattern.permute.xlu1 %v644_v9  ;;  %v407_v9 = vsub.s32 6, %v708_v28 }
  0x46   : > { %365 = vperm.xlu1 %626, %v199_v4  }
  0x48   : > { %435 = vperm.xlu0 %629, %v201_v3  }
  0x4a   : > { %368 = vperm.xlu1 %626, %v200_v1  }
  0x4e   : > { %627 = vset.pattern.permute.xlu1 %v645_v10 }
  0x4f   : > { %394 = vperm.xlu1 %627, %v198_v2  }
  0x53   : > { %400 = vperm.xlu1 %627, %v200_v1  }
  0x57   : > { %403 = vperm.xlu1 %627, %v201_v3  }
  0x5b   : > { %630 = vset.pattern.permute.xlu1 %v646_v11  ;;  %v775_v11 = vrot.slane %v203_v39, %v375_v49 }
  0x5c   : > { %429 = vperm.xlu1 %630, %v199_v4  }
  0x60   : > { %432 = vperm.xlu1 %630, %v200_v1   ;;  %v439_v1 = vsub.s32 7, %v708_v28 }
  0x90   : > { %v688_v12 = vpop.permute.xlu1 %212  ;;  %v207_v13 = vpop.permute.xlu0 %206 }
  0x91   : > { %v221_v42 = vxor.u32 %v720_v36, %v207_v13 }
  0x93   : > { %v229_v52 = vand.u32 %v734_v45, %v221_v42  ;;  %v796_v42 = vrot.slane %v203_v39, %v439_v1 }
  0x94   : > { %v690_v14 = vpop.permute.xlu1 %215  ;;  %v692_v15 = vpop.permute.xlu0 %209 }
  0x95   : > { %v224_v2 = vxor.u32 %v720_v36, %v690_v14  ;;  %v222_v3 = vxor.u32 %v720_v36, %v692_v15 }
  0x99   : > { %v694_v16 = vpop.permute.xlu1 %237  ;;  %v235_v17 = vpop.permute.xlu0 %234 }
  0x9a   : > { %v249_v43 = vxor.u32 %v722_v37, %v235_v17  ;;  %v250_v4 = vxor.u32 %v722_v37, %v694_v16  ;;  %v781_v17 = vrot.slane %v202_v32, %v439_v1 }
  0x9c   : > { %v257_v53 = vand.u32 %v256_v46, %v249_v43 }
  0x9d   : > { %v696_v18 = vpop.permute.xlu1 %240  ;;  %v244_v19 = vpop.permute.xlu0 %243 }
  0x9e   : > { %v252_v59 = vxor.u32 %v722_v37, %v244_v19  ;;  %v261_v61 = vor.u32 %v257_v53, %v229_v52  ;;  %v232_v19 = vand.u32 %v734_v45, %v224_v2  ;;  %v251_v35 = vxor.u32 %v722_v37, %v696_v18 }
  0x9f   : > { %v416_v37 = vrot.slane %v203_v39, %v407_v9 }
  0xa0   : > { %v260_v10 = vand.u32 %v256_v46, %v252_v59  ;;  %v259_v59 = vand.u32 %v256_v46, %v251_v35 }
  0xa2   : > { %v267_v20 = vpop.permute.xlu1 %266  ;;  %v698_v21 = vpop.permute.xlu0 %269  ;;  %v264_v38 = vor.u32 %v260_v10, %v232_v19 }
  0xa3   : > { %v281_v55 = vxor.u32 %v732_v44, %v267_v20  ;;  %v230_v20 = vand.u32 %v734_v45, %v222_v3 }
  0xa5   : > { %v289_v62 = vand.u32 %v745_v54, %v281_v55 }
  0xa6   : > { %v700_v22 = vpop.permute.xlu1 %272 }
  0xa7   : > { %v299_v24 = vpop.permute.xlu0 %298  ;;  %v293_v13 = vor.u32 %v289_v62, %v261_v61 }
  0xa8   : > { %v313_v57 = vxor.u32 %v736_v47, %v299_v24  ;;  %v282_v24 = vxor.u32 %v732_v44, %v698_v21 }
  0xaa   : > { %v702_v23 = vpop.permute.xlu1 %275  ;;  %v321_v6 = vand.u32 %v748_v56, %v313_v57  ;;  %v290_v18 = vand.u32 %v745_v54, %v282_v24 }
  0xab   : > { %v706_v27 = vpop.permute.xlu0 %307  ;;  %v284_v7 = vxor.u32 %v732_v44, %v702_v23  ;;  %v258_v23 = vand.u32 %v256_v46, %v250_v4 }
  0xac   : > { %v325_v28 = vor.u32 %v321_v6, %v293_v13  ;;  %v316_v31 = vxor.u32 %v736_v47, %v706_v27  ;;  %v223_v27 = vxor.u32 %v720_v36, %v688_v12 }
  0xad   : > { %v292_v30 = vand.u32 %v745_v54, %v284_v7 }
  0xae   : > { %v324_v55 = vand.u32 %v748_v56, %v316_v31 }
  0xaf   : > { %v704_v26 = vpop.permute.xlu1 %301  ;;  %v296_v53 = vor.u32 %v292_v30, %v264_v38 }
  0xb0   : > { %v717_v33 = vpop.permute.xlu0 %333 }
  0xb1   : > { %v346_v61 = vxor.u32 %v751_v58, %v717_v33  ;;  %v328_v33 = vor.u32 %v324_v55, %v296_v53 }
  0xb3   : > { %v710_v29 = vpop.permute.xlu1 %304  ;;  %v354_v7 = vand.u32 %v772_v8, %v346_v61 }
  0xb5   : > { %v363_v40 = vpop.permute.xlu0 %362 }
  0xb6   : > { %v377_v15 = vxor.u32 %v754_v60, %v363_v40  ;;  %v314_v40 = vxor.u32 %v736_v47, %v704_v26  ;;  %v283_v26 = vxor.u32 %v732_v44, %v700_v22  ;;  %v231_v44 = vand.u32 %v734_v45, %v223_v27 }
  0xb8   : > { %v331_v34 = vpop.permute.xlu1 %330  ;;  %v385_v21 = vand.u32 %v775_v11, %v377_v15  ;;  %v291_v3 = vand.u32 %v745_v54, %v283_v26  ;;  %v263_v6 = vor.u32 %v259_v59, %v231_v44 }
  0xb9   : > { %v742_v51 = vpop.permute.xlu0 %371  ;;  %v345_v63 = vxor.u32 %v751_v58, %v331_v34  ;;  %v790_v34 = vrot.slane %v202_v32, %v407_v9  ;;  %v262_v32 = vor.u32 %v258_v23, %v230_v20  ;;  %v315_v9 = vxor.u32 %v736_v47, %v710_v29 }
  0xba   : > { %v380_v12 = vxor.u32 %v754_v60, %v742_v51  ;;  %v295_v29 = vor.u32 %v291_v3, %v263_v6 }
  0xbb   : > { %v353_v14 = vand.u32 %v772_v8, %v345_v63  ;;  %v294_v63 = vor.u32 %v290_v18, %v262_v32  ;;  %v323_v24 = vand.u32 %v748_v56, %v315_v9 }
  0xbc   : > { %v728_v41 = vpop.permute.xlu1 %336  ;;  %v388_v45 = vand.u32 %v775_v11, %v380_v12 }
  0xbd   : > { %v357_v43 = vor.u32 %v353_v14, %v325_v28  ;;  %v347_v54 = vxor.u32 %v751_v58, %v728_v41 }
  0xbe   : > { %v767_v5 = vpop.permute.xlu0 %397 }
  0xbf   : > { %v389_v36 = vor.u32 %v385_v21, %v357_v43  ;;  %v410_v19 = vxor.u32 %v790_v34, %v767_v5  ;;  %v355_v35 = vand.u32 %v772_v8, %v347_v54 }
  0xc0   : > { %v740_v50 = vpop.permute.xlu1 %339 }
  0xc1   : > { %v348_v48 = vxor.u32 %v751_v58, %v740_v50  ;;  %v322_v50 = vand.u32 %v748_v56, %v314_v40  ;;  %v418_v38 = vand.u32 %v416_v37, %v410_v19 }
  0xc3   : > { %v427_v25 = vpop.permute.xlu0 %426  ;;  %v356_v39 = vand.u32 %v772_v8, %v348_v48  ;;  %v326_v51 = vor.u32 %v322_v50, %v294_v63 }
  0xc4   : > { %v441_v49 = vxor.u32 %v781_v17, %v427_v25 }
  0xc5   : > { %v758_v0 = vpop.permute.xlu1 %365  ;;  %v360_v10 = vor.u32 %v356_v39, %v328_v33  ;;  %v358_v23 = vor.u32 %v354_v7, %v326_v51 }
  0xc6   : > { %v449_v22 = vand.u32 %v796_v42, %v441_v49  ;;  %v378_v46 = vxor.u32 %v754_v60, %v758_v0  ;;  %v594_v0 = vld [vmem:[%s860_s3] ss:$0 sm:$0xff]  ;;  %v327_v49 = vor.u32 %v323_v24, %v295_v29 }
  0xc7   : > { %v436_v2 = vpop.permute.xlu0 %435  ;;  %v392_v30 = vor.u32 %v388_v45, %v360_v10 }
  0xc8   : > { %v444_v13 = vxor.u32 %v781_v17, %v436_v2  ;;  %v386_v15 = vand.u32 %v775_v11, %v378_v46  ;;  %v359_v27 = vor.u32 %v355_v35, %v327_v49 }
  0xc9   : > { %v779_v16 = vpop.permute.xlu1 %368 }
  0xca   : > { %v379_v25 = vxor.u32 %v754_v60, %v779_v16  ;;  %v452_v41 = vand.u32 %v796_v42, %v444_v13  ;;  %v390_v5 = vor.u32 %v386_v15, %v358_v23 }
  0xcc   : > { %v387_v56 = vand.u32 %v775_v11, %v379_v25  ;;  %v422_v32 = vor.u32 %v418_v38, %v390_v5 }
  0xce   : > { %v395_v52 = vpop.permute.xlu1 %394  ;;  %v391_v26 = vor.u32 %v387_v56, %v359_v27 }
  0xcf   : > { %v409_v57 = vxor.u32 %v790_v34, %v395_v52 }
  0xd1   : > { %v417_v62 = vand.u32 %v416_v37, %v409_v57 }
  0xd2   : > { %v401_v1 = vpop.permute.xlu1 %400 }
  0xd3   : > { %v421_v4 = vor.u32 %v417_v62, %v389_v36  ;;  %v411_v40 = vxor.u32 %v790_v34, %v401_v1 }
  0xd5   : > { %v453_v14 = vor.u32 %v449_v22, %v421_v4  ;;  %v419_v18 = vand.u32 %v416_v37, %v411_v40 }
  0xd6   : > { %v404_v20 = vpop.permute.xlu1 %403 }
  0xd7   : > { %v412_v47 = vxor.u32 %v790_v34, %v404_v20  ;;  %vm457_vm0 = vcmp.eq.s32.totalorder %v453_v14, 0  ;;  %v423_v59 = vor.u32 %v419_v18, %v391_v26 }
  0xd8   : > { %v465_v28 = vsel %vm457_vm0, %v594_v0, 0 }
  0xd9   : > { %v420_v31 = vand.u32 %v416_v37, %v412_v47  ;;  %v470_v58 = vshra.s32 %v465_v28, 16 }
  0xdb   : > { %v424_v43 = vor.u32 %v420_v31, %v392_v30  ;;  %v430_v21 = vpop.permute.xlu1 %429  ;;  %v472_v48 = vcvt.s32.f32 %v470_v58 }
  0xdc   : > { %v442_v60 = vxor.u32 %v781_v17, %v430_v21 }
  0xdd   : > { %473 = vmax.xlane.f32.xlu1 %v472_v48  ;;  %v456_v16 = vor.u32 %v452_v41, %v424_v43 }
  0xde   : > { %v450_v52 = vand.u32 %v796_v42, %v442_v60 }
  0xdf   : > { %v433_v8 = vpop.permute.xlu1 %432  ;;  %vm460_vm1 = vcmp.eq.s32.totalorder %v456_v16, 0 }
  0xe0   : > { %v443_v34 = vxor.u32 %v781_v17, %v433_v8  ;;  %v468_v53 = vsel %vm460_vm1, %v594_v0, 0  ;;  %v454_v55 = vor.u32 %v450_v52, %v422_v32  ;;  %v469_v17 = vand.u32 65535, %v465_v28 }
  0xe1   : > { %v512_v57 = vshra.s32 %v468_v53, 16  ;;  %v511_v33 = vand.u32 65535, %v468_v53 }
  0xe2   : > { %v451_v11 = vand.u32 %v796_v42, %v443_v34  ;;  %vm458_vm2 = vcmp.eq.s32.totalorder %v454_v55, 0  ;;  %v471_v63 = vcvt.s32.f32 %v469_v17 }
  0xe3   : > { %v514_v50 = vcvt.s32.f32 %v512_v57  ;;  %v466_v61 = vsel %vm458_vm2, %v594_v0, 0  ;;  %v513_v7 = vcvt.s32.f32 %v511_v33 }
  0xe4   : > { %v484_v12 = vshra.s32 %v466_v61, 16  ;;  %v455_v36 = vor.u32 %v451_v11, %v423_v59  ;;  %v483_v42 = vand.u32 65535, %v466_v61 }
  0xe5   : > { %515 = vmax.xlane.f32.xlu1 %v514_v50 }
  0xe6   : > { %v486_v37 = vcvt.s32.f32 %v484_v12  ;;  %vm459_vm3 = vcmp.eq.s32.totalorder %v455_v36, 0  ;;  %v485_v3 = vcvt.s32.f32 %v483_v42 }
  0xe7   : > { %v467_v39 = vsel %vm459_vm3, %v594_v0, 0 }
  0xe8   : > { %487 = vmax.xlane.f32.xlu0 %v486_v37  ;;  %v498_v62 = vshra.s32 %v467_v39, 16  ;;  %v497_v4 = vand.u32 65535, %v467_v39 }
  0xea   : > { %v500_v22 = vcvt.s32.f32 %v498_v62  ;;  %v499_v9 = vcvt.s32.f32 %v497_v4 }
  0xec   : > { %501 = vmax.xlane.f32.xlu0 %v500_v22 }
 0x16a   : > { %v474_v44 = vpop.xlane.xlu1 %473 }
 0x16b   : > { %vm475_vm4 = vcmp.eq.f32.partialorder %v472_v48, %v474_v44  ;;  %v480_v13 = vcvt.f32.s32 %v474_v44 }
 0x16c   : > { %v476_v46 = vsel %vm475_vm4, %v471_v63, -inf }
 0x16d   : > { %477 = vmax.xlane.f32.xlu0 %v476_v46  ;;  %v481_v14 = vshll.u32 %v480_v13, 16 }
 0x172   : > { %v516_v1 = vpop.xlane.xlu1 %515 }
 0x173   : > { %vm517_vm6 = vcmp.eq.f32.partialorder %v514_v50, %v516_v1  ;;  %v522_v29 = vcvt.f32.s32 %v516_v1 }
 0x174   : > { %v518_v10 = vsel %vm517_vm6, %v513_v7, -inf }
 0x175   : > { %v488_v2 = vpop.xlane.xlu0 %487  ;;  %v523_v31 = vshll.u32 %v522_v29, 16 }
 0x176   : > { %vm489_vm5 = vcmp.eq.f32.partialorder %v486_v37, %v488_v2  ;;  %v494_v19 = vcvt.f32.s32 %v488_v2 }
 0x177   : > { %v490_v6 = vsel %vm489_vm5, %v485_v3, -inf }
 0x178   : > { %491 = vmax.xlane.f32.xlu1 %v490_v6  ;;  %v495_v47 = vshll.u32 %v494_v19, 16 }
 0x179   : > { %v502_v51 = vpop.xlane.xlu0 %501 }
 0x17a   : > { %vm503_vm7 = vcmp.eq.f32.partialorder %v500_v22, %v502_v51  ;;  %v508_v23 = vcvt.f32.s32 %v502_v51 }
 0x17b   : > { %v504_v45 = vsel %vm503_vm7, %v499_v9, -inf }
 0x17c   : > { %519 = vmax.xlane.f32.xlu1 %v518_v10  ;;  %505 = vmax.xlane.f32.xlu0 %v504_v45  ;;  %v509_v41 = vshll.u32 %v508_v23, 16 }
 0x1fa   : > { %v478_v0 = vpop.xlane.xlu0 %477 }
 0x1fb   : > { %v479_v54 = vcvt.f32.s32 %v478_v0 }
 0x1fd   : > { %v482_v15 = vadd.s32 %v481_v14, %v479_v54 }
 0x1ff   : > { %526 = vst.msk [vmem:[%s197_s29] sm:$0xff] %vm525_vm8, %v482_v15 }
 0x205   : > { %v492_v20 = vpop.xlane.xlu1 %491 }
 0x206   : > { %v493_v24 = vcvt.f32.s32 %v492_v20 }
 0x208   : > { %v496_v25 = vadd.s32 %v495_v47, %v493_v24 }
 0x209   : > { %v520_v28 = vpop.xlane.xlu1 %519  ;;  %v506_v30 = vpop.xlane.xlu0 %505 }
 0x20a   : > { %527 = vst.msk [vmem:[%s197_s29 + $0x8] sm:$0xff] %vm525_vm8, %v496_v25  ;;  %v521_v58 = vcvt.f32.s32 %v520_v28  ;;  %v507_v35 = vcvt.f32.s32 %v506_v30 }
 0x20c   : > { %v524_v5 = vadd.s32 %v523_v31, %v521_v58  ;;  %v510_v38 = vadd.s32 %v509_v41, %v507_v35 }
 0x20e   : > { %529 = vst.msk [vmem:[%s197_s29 + $0x18] sm:$0xff] %vm525_vm8, %v524_v5  ;;  %528 = vst.msk [vmem:[%s197_s29 + $0x10] sm:$0xff] %vm525_vm8, %v510_v38 }
 0x20f PF: > { %s14_s15 = sadd.s32 1, %s637_s15  }
 0x210   : > { %p11_p4 = scmp.ge.s32.totalorder %s14_s15, 10  }
 0x212   :  { %13 = sbr.rel (!%p11_p4) target bundleno = 1 (0x1), region = 66 }

</bundles_post_ra>
